<compile_context>
chip_gen: v6e
topology: v6e:2x2x1
jax: 0.10.0
libtpu: 0.0.40
codegen_flags: <defaults>
</compile_context>

<pallas_src>
import jax
import jax.numpy as jnp
from jax.experimental import pallas as pl
from jax.experimental.pallas import tpu as pltpu


def _build_pos_embedding(emb_size: int, maxlen: int) -> jnp.ndarray:
    """Deterministic sinusoidal table, identical math to the torch __init__ (emb_size even)."""
    tk_over_2pi = 10000.0 ** (jnp.arange(0, emb_size, 2, dtype=jnp.float32) / emb_size)
    t = jnp.arange(maxlen, dtype=jnp.float32)
    outer = jnp.outer(t, 1.0 / tk_over_2pi)                    # (maxlen, emb_size//2)
    pos = jnp.zeros((maxlen, emb_size), dtype=jnp.float32)
    pos = pos.at[:, 0::2].set(jnp.sin(outer))
    pos = pos.at[:, 1::2].set(jnp.cos(outer))
    return pos                                                  # (maxlen, emb_size)


def _pos_enc_kernel(x_ref, pos_ref, o_ref):
    # x_ref:   (TS, B, E) token-embedding tile
    # pos_ref: (TS, E)    positional-table tile (same sequence rows, batch-agnostic)
    # o_ref:   (TS, B, E)
    # The batch broadcast of pos happens in-register; it is never materialized in HBM or VMEM.
    o_ref[...] = x_ref[...] + pos_ref[...][:, None, :].astype(x_ref.dtype)


def _choose_tile_s(S: int, B: int, E: int, itemsize: int, target_bytes: int = 2 << 20) -> int:
    """Pick a sequence tile so each x tile is ~target_bytes.  Double-buffered (2 in + 2 out)
    that is ~4 * target_bytes of VMEM plus two small pos tiles -> safely under the scoped-VMEM
    default on v5e/v6e/v7x while keeping per-step pipeline overhead negligible.  The pos block
    is (TS, E), so TS must be a multiple of 8 (sublane) unless it equals the full seq length."""
    rows = target_bytes // max(1, B * E * itemsize)
    if rows >= S:
        return S
    ts = max(8, (rows // 8) * 8)
    return min(ts, S)


def positional_encoding_forward(token_embedding: jnp.ndarray,
                                pos_embedding: jnp.ndarray,
                                *,
                                tile_s: int | None = None,
                                donate_input: bool = False) -> jnp.ndarray:
    """token_embedding: (S, B, E). pos_embedding: (maxlen, E) with maxlen >= S. Returns (S, B, E)."""
    S, B, E = token_embedding.shape
    maxlen, e2 = pos_embedding.shape
    assert e2 == E and maxlen >= S, "pos table must be (maxlen>=S, emb_size)"
    pos_slice = pos_embedding if maxlen == S else pos_embedding[:S, :]   # static slice (XLA glue)

    itemsize = token_embedding.dtype.itemsize
    if tile_s is None:
        tile_s = _choose_tile_s(S, B, E, itemsize)
    tile_s = min(tile_s, S)
    if tile_s != S and tile_s % 8 != 0:                         # keep the (8,128) rule for the pos block
        tile_s = min(S, max(8, (tile_s // 8) * 8))

    grid = (pl.cdiv(S, tile_s),)

    extra = {}
    if donate_input:
        # Reuse token_embedding's HBM buffer as the output buffer (input 0 -> output 0).
        # Only valid if the caller does not read token_embedding afterwards.
        extra["input_output_aliases"] = {0: 0}

    return pl.pallas_call(
        _pos_enc_kernel,
        out_shape=jax.ShapeDtypeStruct((S, B, E), token_embedding.dtype),
        grid=grid,
        in_specs=[
            # Last two block dims (B, E) equal the full array dims -> always legal; for realistic
            # transformer widths (E a multiple of 128) the output stores are fully lane-dense.
            pl.BlockSpec((tile_s, B, E), lambda i: (i, 0, 0)),
            pl.BlockSpec((tile_s, E), lambda i: (i, 0)),
        ],
        out_specs=pl.BlockSpec((tile_s, B, E), lambda i: (i, 0, 0)),
        compiler_params=pltpu.CompilerParams(
            # Independent tiles: lets v7x shard the grid across its two TensorCores.
            dimension_semantics=("parallel",),
        ),
        **extra,
    )(token_embedding, pos_slice)


if __name__ == "__main__":
    # Small shapes consistent with the module (seq-first layout).
    seq_len, batch, emb_size = 16, 2, 32
    maxlen = 64  # semantics identical to maxlen=5000, just a smaller table for the demo

    key = jax.random.PRNGKey(0)
    token_embedding = jax.random.normal(key, (seq_len, batch, emb_size), dtype=jnp.float32)
    pos_embedding = _build_pos_embedding(emb_size, maxlen)

    # tile_s=8 forces grid=(2,) even at this tiny demo size so the pipelined/tiled path is
    # exercised; at real sizes the auto-chosen tile targets ~2 MiB per step.
    out = positional_encoding_forward(token_embedding, pos_embedding, tile_s=8)
    out = jax.block_until_ready(out)

    # Reference in plain JAX (eval-mode dropout == identity).
    ref = token_embedding + pos_embedding[:seq_len][:, None, :]
    assert out.shape == (seq_len, batch, emb_size)
    assert jnp.allclose(out, ref, atol=1e-6), "mismatch vs reference"

    print("KERNEL_OK")
</pallas_src>

<mosaic_0001>
module attributes {stable_mosaic.version = 11 : i64} {
  func.func @_pos_enc_kernel(%arg0: i32, %arg1: memref<8x2x32xf32, #tpu.memory_space<vmem>>, %arg2: memref<8x32xf32, #tpu.memory_space<vmem>>, %arg3: memref<8x2x32xf32, #tpu.memory_space<vmem>>) attributes {dimension_semantics = [#tpu.dimension_semantics<parallel>], iteration_bounds = array<i64: 2>, scalar_prefetch = 0 : i64, scratch_operands = 0 : i64, tpu.core_type = #tpu.core_type<tc>, window_params = [{transform_indices = @transform_0, window_bounds = array<i64: 8, 2, 32>}, {transform_indices = @transform_1, window_bounds = array<i64: 8, 32>}, {transform_indices = @transform_2, window_bounds = array<i64: 8, 2, 32>}]} {
    %c0 = arith.constant 0 : index
    %c0_0 = arith.constant 0 : index
    %c0_1 = arith.constant 0 : index
    %0 = vector.load %arg1[%c0, %c0_0, %c0_1] : memref<8x2x32xf32, #tpu.memory_space<vmem>>, vector<8x2x32xf32>
    %c0_2 = arith.constant 0 : index
    %c0_3 = arith.constant 0 : index
    %1 = vector.load %arg2[%c0_2, %c0_3] : memref<8x32xf32, #tpu.memory_space<vmem>>, vector<8x32xf32>
    %2 = vector.shape_cast %1 : vector<8x32xf32> to vector<8x1x32xf32>
    %3 = vector.broadcast %2 : vector<8x1x32xf32> to vector<8x2x32xf32>
    %4 = arith.addf %0, %3 : vector<8x2x32xf32>
    %c0_4 = arith.constant 0 : index
    %c0_5 = arith.constant 0 : index
    %c0_6 = arith.constant 0 : index
    %5 = vector.load %arg3[%c0_4, %c0_5, %c0_6] : memref<8x2x32xf32, #tpu.memory_space<vmem>>, vector<8x2x32xf32>
    tpu.vector_store %arg3[%c0_4, %c0_5, %c0_6], %4 {strides = array<i32>} : memref<8x2x32xf32, #tpu.memory_space<vmem>>, vector<8x2x32xf32>,
    return
  }
  func.func @transform_0(%arg0: i32) -> (i32, i32, i32) {
    %c0_i32 = arith.constant 0 : i32
    %c0_i32_0 = arith.constant 0 : i32
    %c0_i32_1 = arith.constant 0 : i32
    return %arg0, %c0_i32, %c0_i32_0 : i32, i32, i32
  }
  func.func @transform_1(%arg0: i32) -> (i32, i32) {
    %c0_i32 = arith.constant 0 : i32
    %c0_i32_0 = arith.constant 0 : i32
    return %arg0, %c0_i32 : i32, i32
  }
  func.func @transform_2(%arg0: i32) -> (i32, i32, i32) {
    %c0_i32 = arith.constant 0 : i32
    %c0_i32_0 = arith.constant 0 : i32
    %c0_i32_1 = arith.constant 0 : i32
    return %arg0, %c0_i32, %c0_i32_0 : i32, i32, i32
  }
}

</mosaic_0001>

<bundles_post_ra>
// kernel: tpu_custom_call.1
= control target key start
LH: loop header
LB: loop body
LE: loop exit
PB: predicated region body
PF: predicated region fallthrough
CT: control target
= control target key end

     0   :  { %7 = vsyncpa [#allocation3], 0  ;;  %s868_s0 = inlined_call_operand.hbm [shape: f32[16,2,32], index: 0, kind: input, shape index: {}]   ;;  %s869_s1 = inlined_call_operand.hbm [shape: f32[16,32], index: 1, kind: input, shape index: {}]   ;;  %s870_s2 = inlined_call_operand.hbm [shape: f32[16,2,32], index: 2, kind: output, shape index: {}]  }
   0x1   :  { %9 = vsyncpa [#allocation3 + $0x1], 0 }
   0x2   :  { %10 = vsyncpa [#allocation6], 0 }
   0x3   :  { %12 = vsyncpa [#allocation6 + $0x1], 0 }
   0x4   :  { %13 = vsyncpa [#allocation4], 0 }
   0x5   :  { %15 = vsyncpa [#allocation4 + $0x1], 0  ;;  %s651_s9 = smov 0   ;;  %s653_s10 = smov 0  }
   0x6   :  { %s655_s11 = smov 0   ;;  %s657_s12 = smov 0  }
   0x7 LB: > { %s672_s13 = sadd.s32 4294967295, %s626_s12   ;;  %s427_s14 = sadd.s32 4294967294, %s626_s12   ;;  %s626_s12 = sphi %s657_s12, %s887_s12   ;;  %s622_s11 = sphi %s655_s11, %s886_s11   ;;  %s618_s10 = sphi %s653_s10, %s885_s10   ;;  %s614_s9 = sphi %s651_s9, %s884_s9  }
   0x8   : > { %s676_s15 = sadd.s32 1, %s626_s12   ;;  %s28_s16 = sadd.s32 1, %s622_s11 }
   0x9   : > { %s25_s17 = ssub.s32 %s626_s12, %s676_s15  ;;  %p35_p0 = scmp.ne.s32.totalorder %s622_s11, %s618_s10 }
   0xa   : > { %p26_p1 = scmp.eq.s32.totalorder %s25_s17, 0  ;;  %p36_p2 = scmp.eq.s32.totalorder %s626_s12, 0 }
   0xb   : > { %p41_p3 = scmp.ne.s32.totalorder %s618_s10, %s614_s9  ;;  %p42_p4 = scmp.eq.s32.totalorder %s672_s13, 0 }
   0xc   : > { %s688_s18 = scalar_select %p26_p1, %s622_s11, %s28_s16  }
   0xd   : > { %p690_p5 = por %p36_p2, %p35_p0  ;;  %p694_p6 = por %p42_p4, %p41_p3 }
   0xe   : > { %p91_p7 = scmp.eq.s32.totalorder %s672_s13, 1  ;;  %p97_p8 = scmp.eq.s32.totalorder %s427_s14, 1 }
   0xf   : > { %s874_s20 = scalar_select %p694_p6, 1, 0 }
  0x10   : > { %p463_p10 = scmp.lt.s32.totalorder %s626_s12, 2  ;;  %p701_p11 = por %p91_p7, %p35_p0 }
  0x11   : > { %p705_p12 = por %p97_p8, %p41_p3  ;;  %s710_s23 = sand.u32 1, %s622_s11  }
  0x12   : > { %s875_s21 = scalar_select %p701_p11, 1, 0 }
  0x13   : > { %s876_s22 = scalar_select %p705_p12, 1, 0 }
  0x14   : > { %s444_s24 = sshll.u32 %s626_s12, 8  ;;  %s430_s25 = sshll.u32 %s710_s23, 4 }
  0x15   : > { %s717_s28 = scalar_lea.hbm %s868_s0, %s444_s24  ;;  %s121_s29 = scalar_lea.vmem [#allocation2], %s430_s25 }
  0x16   : > { %s128_s30 = sshll.u32 %s121_s29, 4  ;;  %p721_p13 = pnand %p463_p10, %p690_p5  ;;  %s725_s30 = int_to_ptr.vmem [resolvable:$true] %s128_s30 }
  0x17   : > { %s118_s4 = scalar_lea.sflag [#allocation3], %s710_s23  ;;  %s502_s5 = scalar_lea.hbm %s717_s28, 256 }
  0x18   : > { %p503_p0 = scmp.ne.s32.totalorder %s717_s28, %s502_s5  ;;  %p504_p1 = pneg %p721_p13 }
  0x19   : > { %s507_s8 = scalar_lea.hbm %s868_s0, 512  ;;  %p508_p4 = scmp.lt.s32.totalorder %s717_s28, %s868_s0 }
  0x1a   : > { %p505_p2 = pnand %p504_p1, %p503_p0  ;;  %p509_p5 = scmp.lt.s32.totalorder %s507_s8, %s502_s5 }
  0x1c   : > { %p506_p3 = pneg %p505_p2  ;;  %p510_p7 = por %p509_p5, %p508_p4 }
  0x1e   : > { %p511_p8 = pnand %p510_p7, %p506_p3 }
  0x20   : > { %514 = shalt.err (!%p511_p8)
}
  0x21   : > { %s515_s17 = scalar_lea.vmem %s725_s30, 256  ;;  %s628_s19 = smov [#allocation2]  }
  0x22   : > { %p516_p10 = scmp.ne.s32.totalorder %s725_s30, %s515_s17  ;;  %s520_s24 = sshll.u32 %s628_s19, 4  ;;  %s521_s24 = int_to_ptr.vmem [resolvable:$false] %s520_s24 }
  0x23   : > { %s522_s25 = scalar_lea.vmem %s521_s24, 512  ;;  %p523_p9 = scmp.lt.s32.totalorder %s725_s30, %s521_s24 }
  0x24   : > { %p518_p0 = pnand %p516_p10, %p504_p1  ;;  %p524_p12 = scmp.lt.s32.totalorder %s522_s25, %s515_s17 }
  0x26   : > { %p519_p2 = pneg %p518_p0  ;;  %p525_p11 = por %p524_p12, %p523_p9 }
  0x28   : > { %p526_p4 = pnand %p525_p11, %p519_p2 }
  0x2a   : > { %529 = shalt.err (!%p526_p4)
}
  0x2b   : > { %s629_s26 = smov 32   ;;  %s630_s27 = smov 2  }
  0x2c   : > { %455 = dma.hbm_to_vmem [thread:$0]  (!%p721_p13), %s717_s28, 256, %s725_s30, %s118_s4, %s629_s26, %s629_s26, %s630_s27  }
  0x2d   : > { %p435_p3 = scmp.ge.s32.totalorder %s626_s12, 1  ;;  %p154_p5 = scmp.lt.s32.totalorder %s626_s12, 3 }
  0x2e   : > { %s433_s29 = sshll.u32 %s710_s23, 3  ;;  %s434_s6 = sshll.u32 %s626_s12, 7 }
  0x2f   : > { %p757_p9 = pnand %p435_p3, %p154_p5  ;;  %s142_s7 = scalar_lea.vmem [#allocation5], %s433_s29 }
  0x30   : > { %s149_s8 = sshll.u32 %s142_s7, 4  ;;  %s147_s17 = scalar_lea.hbm %s869_s1, %s434_s6  ;;  %s150_s8 = int_to_ptr.vmem [resolvable:$true] %s149_s8 }
  0x31   : > { %s878_s5 = scalar_select %p757_p9, 1, 0 }
  0x32   : > { %s139_s19 = scalar_lea.sflag [#allocation6], %s710_s23  ;;  %s530_s24 = scalar_lea.hbm %s147_s17, 128 }
  0x33   : > { %p531_p11 = scmp.ne.s32.totalorder %s147_s17, %s530_s24  ;;  %s535_s4 = scalar_lea.hbm %s869_s1, 256 }
  0x34   : > { %p536_p8 = scmp.lt.s32.totalorder %s147_s17, %s869_s1  ;;  %p537_p10 = scmp.lt.s32.totalorder %s535_s4, %s530_s24 }
  0x35   : > { %p533_p12 = pnand %p531_p11, %p504_p1 }
  0x36   : > { %p538_p0 = por %p537_p10, %p536_p8 }
  0x37   : > { %p534_p7 = pneg %p533_p12 }
  0x39   : > { %p539_p2 = pnand %p538_p0, %p534_p7 }
  0x3b   : > { %542 = shalt.err (!%p539_p2)
}
  0x3c   : > { %s543_s27 = scalar_lea.vmem %s150_s8, 128  ;;  %s631_s23 = smov [#allocation5]  }
  0x3d   : > { %p544_p4 = scmp.ne.s32.totalorder %s150_s8, %s543_s27  ;;  %s548_s29 = sshll.u32 %s631_s23, 4  ;;  %s549_s29 = int_to_ptr.vmem [resolvable:$false] %s548_s29 }
  0x3e   : > { %s550_s6 = scalar_lea.vmem %s549_s29, 256  ;;  %p551_p11 = scmp.lt.s32.totalorder %s150_s8, %s549_s29 }
  0x3f   : > { %p546_p3 = pnand %p544_p4, %p504_p1  ;;  %p552_p12 = scmp.lt.s32.totalorder %s550_s6, %s543_s27 }
  0x41   : > { %p547_p5 = pneg %p546_p3  ;;  %p553_p6 = por %p552_p12, %p551_p11 }
  0x43   : > { %p554_p9 = pnand %p553_p6, %p547_p5 }
  0x45   : > { %557 = shalt.err (!%p554_p9)
}
  0x46   : > { %458 = dma.hbm_to_vmem [thread:$0]  (!%p721_p13), %s147_s17, 128, %s150_s8, %s139_s19  }
  0x47   : > { %p879_p7 = scmp.ne.s32.totalorder %s878_s5, 0 }
  0x48   : > { %s783_s7 = sand.u32 (!%p879_p7), 1, %s618_s10   ;;  %p880_p6 = scmp.ne.s32.totalorder (!%p879_p7), %s874_s20, 0 }
  0x49   : > { %158 = sbr.rel (%p879_p7) target bundleno = 116 (0x74), region = 28  ;;  %s436_s14 = sshll.u32 (!%p879_p7), %s783_s7, 4 }
  0x4a   : > { %s161_s16 = scalar_lea.sflag (!%p879_p7), [#allocation3], %s783_s7  ;;  %s789_s24 = scalar_lea.vmem (!%p879_p7), [#allocation2], %s436_s14 }
  0x4e   : > { %601 = dma.done.wait (%p880_p6), %s161_s16, 256  }
  0x4f   : > { %603 = vsyncadd (%p880_p6), %s161_s16, 4294967040  ;;  %s437_s3 = sshll.u32 %s783_s7, 3  ;;  %s170_s5 = scalar_lea.sflag [#allocation6], %s783_s7 }
  0x50   : > { %s173_s8 = scalar_lea.vmem [#allocation5], %s437_s3 }
  0x51   : > { %605 = dma.done.wait (%p880_p6), %s170_s5, 128  }
  0x52   : > { %607 = vsyncadd (%p880_p6), %s170_s5, 4294967168  ;;  %v215_v0 = vlaneseq  ;;  %v632_v1 = vmov 1966171168   ;;  %v209_v6 = vld [vmem:[%s173_s8] sm:$0xff]  ;;  %vm308_vm0 = vcmask 254976   ;;  %s198_s20 = scalar_lea.vmem [#allocation7], %s436_s14 }
  0x53   : > { %v213_v2 = vunpack.c.l.s4 %v632_v1  ;;  %v211_v9 = vcombine.high %v209_v6, %v209_v6  ;;  %v201_v13 = vld [vmem:[%s789_s24] sm:$0x3]  ;;  %v202_v18 = vld [vmem:[%s789_s24 + $0x2] sm:$0x3]  ;;  %v203_v19 = vld [vmem:[%s789_s24 + $0x4] sm:$0x3] }
  0x54   : > { %v216_v3 = vshrl.u32 %v215_v0, 7  ;;  %v205_v25 = vld [vmem:[%s789_s24 + $0x8] sm:$0x3]  ;;  %v204_v26 = vld [vmem:[%s789_s24 + $0x6] sm:$0x3]  ;;  %s331_s17 = sshll.u32 %s198_s20, 4  ;;  %s816_s17 = int_to_ptr.vmem [resolvable:$true] %s331_s17 }
  0x55   : > { %v214_v4 = vunpack.c.0.s8 %v213_v2  ;;  %v206_v33 = vld [vmem:[%s789_s24 + $0xa] sm:$0x3]  ;;  %v207_v34 = vld [vmem:[%s789_s24 + $0xc] sm:$0x3]  ;;  %s445_s19 = sshll.u32 %s672_s13, 8  ;;  %s318_s4 = scalar_lea.sflag [#allocation4], %s783_s7 }
  0x56   : > { %v262_v8 = vsub.s32 0, %v216_v3  ;;  %v208_v40 = vld [vmem:[%s789_s24 + $0xe] sm:$0x3]  ;;  %s822_s30 = scalar_lea.hbm %s870_s2, %s445_s19  ;;  %s558_s25 = scalar_lea.vmem %s816_s17, 256 }
  0x57   : > { %v217_v5 = vsub.s32 %v214_v4, %v216_v3  ;;  %p559_p13 = scmp.ne.s32.totalorder %s816_s17, %s558_s25  ;;  %p881_p1 = scmp.ne.s32.totalorder %s875_s21, 0 }
  0x58   : > { %s633_s26 = smov [#allocation7]  }
  0x59   : > { %v218_v7 = vrot.slane %v209_v6, %v217_v5  ;;  %v225_v12 = vrot.slane %v211_v9, %v217_v5  ;;  %p560_p9 = pnand %p559_p13, %p881_p1  ;;  %s562_s27 = sshll.u32 %s633_s26, 4  ;;  %s563_s27 = int_to_ptr.vmem [resolvable:$false] %s562_s27 }
  0x5a   : > { %s564_s23 = scalar_lea.vmem %s563_s27, 512  ;;  %p565_p10 = scmp.lt.s32.totalorder %s816_s17, %s563_s27 }
  0x5b   : > { %v234_v10 = vrot.slane %v218_v7, %v217_v5  ;;  %v226_v11 = vcombine.high %v218_v7, %v218_v7  ;;  %v241_v17 = vrot.slane %v225_v12, %v217_v5  ;;  %v227_v20 = vcombine.high %v225_v12, %v225_v12  ;;  %p561_p8 = pneg %p560_p9  ;;  %p566_p0 = scmp.lt.s32.totalorder %s564_s23, %s558_s25 }
  0x5d   : > { %v263_v14 = vrot.slane %v234_v10, %v262_v8  ;;  %v248_v15 = vrot.slane %v226_v11, %v217_v5  ;;  %v256_v16 = vcombine.high %v234_v10, %v234_v10  ;;  %v279_v27 = vrot.slane %v241_v17, %v262_v8  ;;  %p567_p2 = por %p566_p0, %p565_p10 }
  0x5e   : > { %v255_v28 = vrot.slane %v227_v20, %v217_v5  ;;  %v257_v29 = vcombine.high %v241_v17, %v241_v17 }
  0x5f   : > { %v300_v21 = vadd.f32 %v263_v14, %v201_v13  ;;  %v267_v22 = vrot.slane %v248_v15, %v262_v8  ;;  %v271_v23 = vrot.slane %v256_v16, %v262_v8  ;;  %v258_v24 = vcombine.high %v248_v15, %v248_v15  ;;  %p568_p4 = pnand %p567_p2, %p561_p8 }
  0x60   : > { %v304_v35 = vadd.f32 %v279_v27, %v205_v25  ;;  %v283_v36 = vrot.slane %v255_v28, %v262_v8  ;;  %v287_v37 = vrot.slane %v257_v29, %v262_v8  ;;  %v259_v38 = vcombine.high %v255_v28, %v255_v28 }
  0x61   : > { %309 = vst.msk [vmem:[%s198_s20] sm:$0x3] %vm308_vm0, %v300_v21  ;;  %v301_v30 = vadd.f32 %v267_v22, %v202_v18  ;;  %v302_v31 = vadd.f32 %v271_v23, %v203_v19  ;;  %v275_v32 = vrot.slane %v258_v24, %v262_v8 }
  0x62   : > { %313 = vst.msk [vmem:[%s198_s20 + $0x8] sm:$0x3] %vm308_vm0, %v304_v35  ;;  %v305_v41 = vadd.f32 %v283_v36, %v206_v33  ;;  %v306_v42 = vadd.f32 %v287_v37, %v207_v34  ;;  %v291_v43 = vrot.slane %v259_v38, %v262_v8 }
  0x63   : > { %310 = vst.msk [vmem:[%s198_s20 + $0x2] sm:$0x3] %vm308_vm0, %v301_v30  ;;  %311 = vst.msk [vmem:[%s198_s20 + $0x4] sm:$0x3] %vm308_vm0, %v302_v31  ;;  %v303_v39 = vadd.f32 %v275_v32, %v204_v26 }
  0x64   : > { %314 = vst.msk [vmem:[%s198_s20 + $0xa] sm:$0x3] %vm308_vm0, %v305_v41  ;;  %315 = vst.msk [vmem:[%s198_s20 + $0xc] sm:$0x3] %vm308_vm0, %v306_v42  ;;  %v307_v44 = vadd.f32 %v291_v43, %v208_v40 }
  0x65   : > { %312 = vst.msk [vmem:[%s198_s20 + $0x6] sm:$0x3] %vm308_vm0, %v303_v39 }
  0x66   : > { %316 = vst.msk [vmem:[%s198_s20 + $0xe] sm:$0x3] %vm308_vm0, %v307_v44 }
  0x67   : > { %571 = shalt.err (!%p568_p4)
}
  0x68   : > { %s572_s29 = scalar_lea.hbm %s822_s30, 256  ;;  %s576_s16 = scalar_lea.hbm %s870_s2, 512 }
  0x69   : > { %p573_p3 = scmp.ne.s32.totalorder %s822_s30, %s572_s29  ;;  %p577_p12 = scmp.lt.s32.totalorder %s822_s30, %s870_s2 }
  0x6a   : > { %p578_p7 = scmp.lt.s32.totalorder %s576_s16, %s572_s29 }
  0x6b   : > { %p574_p5 = pnand %p573_p3, %p881_p1 }
  0x6c   : > { %p579_p6 = por %p578_p7, %p577_p12 }
  0x6d   : > { %p575_p11 = pneg %p574_p5 }
  0x6f   : > { %p580_p13 = pnand %p579_p6, %p575_p11 }
  0x71   : > { %583 = shalt.err (!%p580_p13)
}
  0x72   : > { %s634_s5 = smov 32   ;;  %s635_s8 = smov 2  }
  0x73   : > { %450 = dma.vmem_to_hbm [thread:$0]  (%p881_p1), %s816_s17, 256, %s822_s30, %s318_s4, %s634_s5, %s634_s5, %s635_s8  }
  0x74 PF: > { %s346_s20 = sand.u32 1, %s614_s9   ;;  %p882_p9 = scmp.ne.s32.totalorder %s876_s22, 0 }
  0x75   : > { %p883_p8 = scmp.ge.s32.totalorder %s626_s12, 2  ;;  %s347_s19 = scalar_lea.sflag [#allocation4], %s346_s20 }
  0x77   : > { %p460_p10 = pnand %p883_p8, %p882_p9 }
  0x79   : > { %p461_p0 = pneg %p460_p10 }
  0x7b   : > { %609 = dma.done.wait (%p461_p0), %s347_s19, 256  }
  0x7c   : > { %611 = vsyncadd (%p461_p0), %s347_s19, 4294967040  ;;  %p18_p2 = scmp.ge.s32.totalorder %s676_s15, 4   ;;  %s884_s9 = smov %s618_s10 }
  0x7d   : > { %s885_s10 = smov %s622_s11  ;;  %s886_s11 = smov %s688_s18 }
  0x7e   : > { %s887_s12 = smov %s676_s15  ;;  %20 = sbr.rel (!%p18_p2) target bundleno = 7 (0x7), region = 86 }
  0x83   :  { %352 = vsyncpa [#allocation3], 1 }
  0x84   :  { %354 = vsyncpa [#allocation3 + $0x1], 1 }
  0x85   :  { %355 = vsyncpa [#allocation6], 1 }
  0x86   :  { %357 = vsyncpa [#allocation6 + $0x1], 1 }
  0x87   :  { %358 = vsyncpa [#allocation4], 1 }
  0x88   :  { %360 = vsyncpa [#allocation4 + $0x1], 1 }

</bundles_post_ra>
